<compile_context>
chip_gen: v5e
topology: v5e:2x2
jax: 0.10.0
libtpu: 0.0.40
codegen_flags: <defaults>
</compile_context>

<pallas_src>
import math
import functools

import jax
import jax.numpy as jnp
from jax.experimental import pallas as pl
from jax.experimental.pallas import tpu as pltpu


def mha_kernel(q_ref, k_ref, v_ref,
               wq_ref, bq_ref, wk_ref, bk_ref, wv_ref, bv_ref, wo_ref, bo_ref,
               out_ref, k_heads, v_heads,
               *, num_heads, d_k, compute_dtype):
    """One grid step = (batch element b, query block qi)."""
    qi = pl.program_id(1)
    h, dk = num_heads, d_k
    cd = compute_dtype

    # ---- K/V projection: once per batch element, kept resident in VMEM scratch ----
    @pl.when(qi == 0)
    def _project_kv():
        k_in = k_ref[0].astype(cd)                                   # (S, D)
        v_in = v_ref[0].astype(cd)
        key = jnp.dot(k_in, wk_ref[...].astype(cd),
                      preferred_element_type=jnp.float32) + bk_ref[0]
        val = jnp.dot(v_in, wv_ref[...].astype(cd),
                      preferred_element_type=jnp.float32) + bv_ref[0]
        s = key.shape[0]
        k_heads[...] = jnp.transpose(key.reshape(s, h, dk), (1, 0, 2)).astype(cd)
        v_heads[...] = jnp.transpose(val.reshape(s, h, dk), (1, 0, 2)).astype(cd)

    # ---- Q projection for this query block (scale folded in here: cheaper than
    # ---- scaling the (H, tq, S) score tensor) ----
    scale = 1.0 / math.sqrt(dk)
    q_in = q_ref[0].astype(cd)                                       # (tq, D)
    query = (jnp.dot(q_in, wq_ref[...].astype(cd),
                     preferred_element_type=jnp.float32) + bq_ref[0]) * scale
    tq = query.shape[0]
    qh = jnp.transpose(query.reshape(tq, h, dk), (1, 0, 2)).astype(cd)  # (H, tq, dk)

    # ---- scaled dot-product attention, batched over heads (no explicit K.T) ----
    scores = jnp.einsum('hqd,hkd->hqk', qh, k_heads[...],
                        preferred_element_type=jnp.float32)             # (H, tq, S)
    # TODO(synk): attention mask intentionally ignored -- the PyTorch module calls
    # the non-in-place masked_fill and discards the result, so it has no effect.
    scores = scores - jnp.max(scores, axis=-1, keepdims=True)
    p = jnp.exp(scores)
    p = p * pl.reciprocal(jnp.sum(p, axis=-1, keepdims=True), approx=True)
    # TODO(synk): nn.Dropout on attention probs is identity at inference; omitted.

    ctx = jnp.einsum('hqk,hkd->hqd', p.astype(cd), v_heads[...],
                     preferred_element_type=jnp.float32)                # (H, tq, dk)
    ctx = jnp.transpose(ctx, (1, 0, 2)).reshape(tq, h * dk)             # (tq, D)

    out = jnp.dot(ctx.astype(cd), wo_ref[...].astype(cd),
                  preferred_element_type=jnp.float32) + bo_ref[0]
    out_ref[0] = out.astype(out_ref.dtype)


def _choose_q_block(seq_len, preferred=256):
    """Largest 'nice' query tile (multiple of 8) that divides seq_len."""
    if seq_len <= preferred:
        return seq_len
    for cand in (512, 384, 256, 128, 64, 32, 16, 8):
        if cand <= preferred and cand <= seq_len and seq_len % cand == 0:
            return cand
    return seq_len


def multi_head_attention(q, k, v, params, *, num_heads, mask=None,
                         compute_dtype=None, q_block=256):
    del mask  # No effect in the reference PyTorch forward (non-in-place masked_fill).
    B, S, D = q.shape
    assert D % num_heads == 0, "d_model not divisible by h"
    d_k = D // num_heads
    wq, bq, wk, bk, wv, bv, wo, bo = params
    if compute_dtype is None:
        compute_dtype = q.dtype

    tq = _choose_q_block(S, q_block)
    n_qb = S // tq

    act_q_spec = pl.BlockSpec((1, tq, D), lambda b, qi: (b, qi, 0))
    act_kv_spec = pl.BlockSpec((1, S, D), lambda b, qi: (b, 0, 0))
    # Grid-invariant operands -> single-buffered (no double-buffering needed).
    w_spec = pl.BlockSpec((D, D), lambda b, qi: (0, 0), pipeline_mode=pl.Buffered(1))
    b_spec = pl.BlockSpec((1, D), lambda b, qi: (0, 0), pipeline_mode=pl.Buffered(1))
    out_spec = pl.BlockSpec((1, tq, D), lambda b, qi: (b, qi, 0))

    kernel = functools.partial(mha_kernel, num_heads=num_heads, d_k=d_k,
                               compute_dtype=compute_dtype)

    # VMEM budget derived from the chosen tiles (single-buffered weights,
    # double-buffered activation/output tiles, resident K/V head scratch,
    # plus f32 working-set headroom).
    isz = q.dtype.itemsize
    csz = jnp.dtype(compute_dtype).itemsize
    est = (4 * (D * D + D) * wq.dtype.itemsize          # weights + biases (x1)
           + 2 * tq * D * isz + 2 * 2 * S * D * isz     # q / k / v tiles (x2 each)
           + 2 * tq * D * isz                           # out tiles (x2)
           + 2 * num_heads * S * d_k * csz              # K/V per-head scratch
           + 3 * num_heads * tq * S * 4                 # scores / probs temporaries
           + 4 * tq * D * 4)                            # f32 projection temporaries
    vmem_limit = int(min(112 * 2**20, 16 * 2**20 + 2 * est))

    return pl.pallas_call(
        kernel,
        out_shape=jax.ShapeDtypeStruct((B, S, D), q.dtype),
        grid_spec=pltpu.PrefetchScalarGridSpec(
            num_scalar_prefetch=0,
            grid=(B, n_qb),
            in_specs=[act_q_spec, act_kv_spec, act_kv_spec,
                      w_spec, b_spec, w_spec, b_spec,
                      w_spec, b_spec, w_spec, b_spec],
            out_specs=out_spec,
            scratch_shapes=[pltpu.VMEM((num_heads, S, d_k), compute_dtype),
                            pltpu.VMEM((num_heads, S, d_k), compute_dtype)]),
        compiler_params=pltpu.CompilerParams(
            # The q-block axis reuses K/V scratch written at qi == 0, so it must be
            # "arbitrary"; batch elements are independent -> "parallel" (megacore).
            dimension_semantics=("parallel", "arbitrary"),
            vmem_limit_bytes=vmem_limit),
    )(q, k, v, wq, bq, wk, bk, wv, bv, wo, bo)


def reference_mha(q, k, v, params, *, num_heads):
    """Pure-JAX reference mirroring the PyTorch forward (mask ignored, no dropout)."""
    wq, bq, wk, bk, wv, bv, wo, bo = params
    B, S, D = q.shape
    d_k = D // num_heads

    def proj(x, w, b):
        return x @ w + b[0]

    query = proj(q, wq, bq).reshape(B, S, num_heads, d_k).transpose(0, 2, 1, 3)
    key   = proj(k, wk, bk).reshape(B, S, num_heads, d_k).transpose(0, 2, 1, 3)
    value = proj(v, wv, bv).reshape(B, S, num_heads, d_k).transpose(0, 2, 1, 3)

    scores = jnp.einsum('bhqd,bhkd->bhqk', query, key) / math.sqrt(d_k)
    probs = jax.nn.softmax(scores, axis=-1)
    ctx = jnp.einsum('bhqk,bhkd->bhqd', probs, value)
    ctx = ctx.transpose(0, 2, 1, 3).reshape(B, S, D)
    return ctx @ wo + bo[0]


if __name__ == "__main__":
    B, S, D, H = 2, 8, 32, 4        # batch, seq, d_model, heads
    key = jax.random.PRNGKey(0)
    keys = jax.random.split(key, 12)

    # Deterministic "PyTorch-like" init: U(-1/sqrt(in), 1/sqrt(in)).
    bound = 1.0 / math.sqrt(D)

    def init_linear(kw, kb):
        w = jax.random.uniform(kw, (D, D), jnp.float32, -bound, bound)  # (in, out) == torch W.T
        b = jax.random.uniform(kb, (1, D), jnp.float32, -bound, bound)
        return w, b

    wq, bq = init_linear(keys[0], keys[1])
    wk, bk = init_linear(keys[2], keys[3])
    wv, bv = init_linear(keys[4], keys[5])
    wo, bo = init_linear(keys[6], keys[7])
    params = (wq, bq, wk, bk, wv, bv, wo, bo)

    q = jax.random.normal(keys[8], (B, S, D), jnp.float32)
    k = jax.random.normal(keys[9], (B, S, D), jnp.float32)
    v = jax.random.normal(keys[10], (B, S, D), jnp.float32)

    ref = reference_mha(q, k, v, params, num_heads=H)

    # f32 compute path (tolerance slightly loosened for the approx reciprocal).
    out_f32 = jax.block_until_ready(
        multi_head_attention(q, k, v, params, num_heads=H,
                             compute_dtype=jnp.float32))
    assert out_f32.shape == (B, S, D)
    assert jnp.allclose(out_f32, ref, atol=1e-2, rtol=1e-2), "f32 mismatch vs reference"

    # bf16-matmul / f32-accumulate path (the v6e/v7x fast path).
    to_bf16 = lambda t: t.astype(jnp.bfloat16)
    out_bf16 = jax.block_until_ready(
        multi_head_attention(to_bf16(q), to_bf16(k), to_bf16(v),
                             tuple(to_bf16(p) for p in params),
                             num_heads=H, compute_dtype=jnp.bfloat16))
    assert out_bf16.shape == (B, S, D)
    assert jnp.allclose(out_bf16.astype(jnp.float32), ref, atol=7e-2, rtol=7e-2), \
        "bf16 mismatch vs reference"

    print("KERNEL_OK")
</pallas_src>

<mosaic_0001>
module attributes {stable_mosaic.version = 11 : i64} {
  func.func @mha_kernel(%arg0: i32, %arg1: i32, %arg2: memref<1x8x32xf32, #tpu.memory_space<vmem>>, %arg3: memref<1x8x32xf32, #tpu.memory_space<vmem>>, %arg4: memref<1x8x32xf32, #tpu.memory_space<vmem>>, %arg5: memref<32x32xf32, #tpu.memory_space<vmem>>, %arg6: memref<1x32xf32, #tpu.memory_space<vmem>>, %arg7: memref<32x32xf32, #tpu.memory_space<vmem>>, %arg8: memref<1x32xf32, #tpu.memory_space<vmem>>, %arg9: memref<32x32xf32, #tpu.memory_space<vmem>>, %arg10: memref<1x32xf32, #tpu.memory_space<vmem>>, %arg11: memref<32x32xf32, #tpu.memory_space<vmem>>, %arg12: memref<1x32xf32, #tpu.memory_space<vmem>>, %arg13: memref<1x8x32xf32, #tpu.memory_space<vmem>>, %arg14: memref<4x8x8xf32, #tpu.memory_space<vmem>>, %arg15: memref<4x8x8xf32, #tpu.memory_space<vmem>>) attributes {dimension_semantics = [#tpu.dimension_semantics<parallel>, #tpu.dimension_semantics<arbitrary>], iteration_bounds = array<i64: 2, 1>, scalar_prefetch = 0 : i64, scratch_operands = 2 : i64, tpu.core_type = #tpu.core_type<tc>, window_params = [{transform_indices = @transform_0, window_bounds = array<i64: 1, 8, 32>}, {transform_indices = @transform_1, window_bounds = array<i64: 1, 8, 32>}, {transform_indices = @transform_2, window_bounds = array<i64: 1, 8, 32>}, {pipeline_mode = #tpu.pipeline_mode<synchronous>, transform_indices = @transform_3, window_bounds = array<i64: 32, 32>}, {pipeline_mode = #tpu.pipeline_mode<synchronous>, transform_indices = @transform_4, window_bounds = array<i64: 1, 32>}, {pipeline_mode = #tpu.pipeline_mode<synchronous>, transform_indices = @transform_5, window_bounds = array<i64: 32, 32>}, {pipeline_mode = #tpu.pipeline_mode<synchronous>, transform_indices = @transform_6, window_bounds = array<i64: 1, 32>}, {pipeline_mode = #tpu.pipeline_mode<synchronous>, transform_indices = @transform_7, window_bounds = array<i64: 32, 32>}, {pipeline_mode = #tpu.pipeline_mode<synchronous>, transform_indices = @transform_8, window_bounds = array<i64: 1, 32>}, {pipeline_mode = #tpu.pipeline_mode<synchronous>, transform_indices = @transform_9, window_bounds = array<i64: 32, 32>}, {pipeline_mode = #tpu.pipeline_mode<synchronous>, transform_indices = @transform_10, window_bounds = array<i64: 1, 32>}, {transform_indices = @transform_11, window_bounds = array<i64: 1, 8, 32>}]} {
    %c0_i32 = arith.constant 0 : i32
    %0 = arith.cmpi eq, %arg1, %c0_i32 : i32
    %1 = arith.extui %0 : i1 to i32
    %c0_i32_0 = arith.constant 0 : i32
    %2 = arith.cmpi ne, %1, %c0_i32_0 : i32
    scf.if %2 {
      %c0_26 = arith.constant 0 : index
      %c0_27 = arith.constant 0 : index
      %c0_28 = arith.constant 0 : index
      %42 = vector.load %arg3[%c0_26, %c0_27, %c0_28] : memref<1x8x32xf32, #tpu.memory_space<vmem>>, vector<1x8x32xf32>
      %43 = vector.shape_cast %42 : vector<1x8x32xf32> to vector<8x32xf32>
      %c0_29 = arith.constant 0 : index
      %c0_30 = arith.constant 0 : index
      %c0_31 = arith.constant 0 : index
      %44 = vector.load %arg4[%c0_29, %c0_30, %c0_31] : memref<1x8x32xf32, #tpu.memory_space<vmem>>, vector<1x8x32xf32>
      %45 = vector.shape_cast %44 : vector<1x8x32xf32> to vector<8x32xf32>
      %c0_32 = arith.constant 0 : index
      %c0_33 = arith.constant 0 : index
      %46 = vector.load %arg7[%c0_32, %c0_33] : memref<32x32xf32, #tpu.memory_space<vmem>>, vector<32x32xf32>
      %cst_34 = arith.constant dense<0.000000e+00> : vector<8x32xf32>
      %47 = tpu.matmul %43, %46, %cst_34 {dimension_numbers = #tpu.dot_dimension_numbers<[1], [0], [0], [1], [0, 0, 1, 1], [], []>} : vector<8x32xf32>, vector<32x32xf32>, vector<8x32xf32> -> vector<8x32xf32>
      %c0_35 = arith.constant 0 : index
      %c0_36 = arith.constant 0 : index
      %48 = vector.load %arg8[%c0_35, %c0_36] : memref<1x32xf32, #tpu.memory_space<vmem>>, vector<1x32xf32>
      %49 = vector.shape_cast %48 : vector<1x32xf32> to vector<32xf32>
      %50 = vector.shape_cast %49 : vector<32xf32> to vector<1x32xf32>
      %51 = vector.broadcast %50 : vector<1x32xf32> to vector<8x32xf32>
      %52 = arith.addf %47, %51 : vector<8x32xf32>
      %c0_37 = arith.constant 0 : index
      %c0_38 = arith.constant 0 : index
      %53 = vector.load %arg9[%c0_37, %c0_38] : memref<32x32xf32, #tpu.memory_space<vmem>>, vector<32x32xf32>
      %cst_39 = arith.constant dense<0.000000e+00> : vector<8x32xf32>
      %54 = tpu.matmul %45, %53, %cst_39 {dimension_numbers = #tpu.dot_dimension_numbers<[1], [0], [0], [1], [0, 0, 1, 1], [], []>} : vector<8x32xf32>, vector<32x32xf32>, vector<8x32xf32> -> vector<8x32xf32>
      %c0_40 = arith.constant 0 : index
      %c0_41 = arith.constant 0 : index
      %55 = vector.load %arg10[%c0_40, %c0_41] : memref<1x32xf32, #tpu.memory_space<vmem>>, vector<1x32xf32>
      %56 = vector.shape_cast %55 : vector<1x32xf32> to vector<32xf32>
      %57 = vector.shape_cast %56 : vector<32xf32> to vector<1x32xf32>
      %58 = vector.broadcast %57 : vector<1x32xf32> to vector<8x32xf32>
      %59 = arith.addf %54, %58 : vector<8x32xf32>
      %60 = vector.shape_cast %52 : vector<8x32xf32> to vector<8x4x8xf32>
      %61 = tpu.transpose %60, [1, 0, 2] : vector<8x4x8xf32> -> vector<4x8x8xf32>
      %c0_42 = arith.constant 0 : index
      %c0_43 = arith.constant 0 : index
      %c0_44 = arith.constant 0 : index
      %62 = vector.load %arg14[%c0_42, %c0_43, %c0_44] : memref<4x8x8xf32, #tpu.memory_space<vmem>>, vector<4x8x8xf32>
      tpu.vector_store %arg14[%c0_42, %c0_43, %c0_44], %61 {strides = array<i32>} : memref<4x8x8xf32, #tpu.memory_space<vmem>>, vector<4x8x8xf32>,
      %63 = vector.shape_cast %59 : vector<8x32xf32> to vector<8x4x8xf32>
      %64 = tpu.transpose %63, [1, 0, 2] : vector<8x4x8xf32> -> vector<4x8x8xf32>
      %c0_45 = arith.constant 0 : index
      %c0_46 = arith.constant 0 : index
      %c0_47 = arith.constant 0 : index
      %65 = vector.load %arg15[%c0_45, %c0_46, %c0_47] : memref<4x8x8xf32, #tpu.memory_space<vmem>>, vector<4x8x8xf32>
      tpu.vector_store %arg15[%c0_45, %c0_46, %c0_47], %64 {strides = array<i32>} : memref<4x8x8xf32, #tpu.memory_space<vmem>>, vector<4x8x8xf32>,
    } else {
    }
    %c0 = arith.constant 0 : index
    %c0_1 = arith.constant 0 : index
    %c0_2 = arith.constant 0 : index
    %3 = vector.load %arg2[%c0, %c0_1, %c0_2] : memref<1x8x32xf32, #tpu.memory_space<vmem>>, vector<1x8x32xf32>
    %4 = vector.shape_cast %3 : vector<1x8x32xf32> to vector<8x32xf32>
    %c0_3 = arith.constant 0 : index
    %c0_4 = arith.constant 0 : index
    %5 = vector.load %arg5[%c0_3, %c0_4] : memref<32x32xf32, #tpu.memory_space<vmem>>, vector<32x32xf32>
    %cst = arith.constant dense<0.000000e+00> : vector<8x32xf32>
    %6 = tpu.matmul %4, %5, %cst {dimension_numbers = #tpu.dot_dimension_numbers<[1], [0], [0], [1], [0, 0, 1, 1], [], []>} : vector<8x32xf32>, vector<32x32xf32>, vector<8x32xf32> -> vector<8x32xf32>
    %c0_5 = arith.constant 0 : index
    %c0_6 = arith.constant 0 : index
    %7 = vector.load %arg6[%c0_5, %c0_6] : memref<1x32xf32, #tpu.memory_space<vmem>>, vector<1x32xf32>
    %8 = vector.shape_cast %7 : vector<1x32xf32> to vector<32xf32>
    %9 = vector.shape_cast %8 : vector<32xf32> to vector<1x32xf32>
    %10 = vector.broadcast %9 : vector<1x32xf32> to vector<8x32xf32>
    %11 = arith.addf %6, %10 : vector<8x32xf32>
    %cst_7 = arith.constant 0.353553385 : f32
    %12 = vector.broadcast %cst_7 : f32 to vector<8x32xf32>
    %13 = arith.mulf %11, %12 : vector<8x32xf32>
    %14 = vector.shape_cast %13 : vector<8x32xf32> to vector<8x4x8xf32>
    %15 = tpu.transpose %14, [1, 0, 2] : vector<8x4x8xf32> -> vector<4x8x8xf32>
    %c0_8 = arith.constant 0 : index
    %c0_9 = arith.constant 0 : index
    %c0_10 = arith.constant 0 : index
    %16 = vector.load %arg14[%c0_8, %c0_9, %c0_10] : memref<4x8x8xf32, #tpu.memory_space<vmem>>, vector<4x8x8xf32>
    "tpu.trace_start"() <{level = 10 : i32, message = "hqd,hkd->hqk"}> : () -> ()
    %cst_11 = arith.constant dense<0.000000e+00> : vector<4x8x8xf32>
    %17 = tpu.matmul %15, %16, %cst_11 {dimension_numbers = #tpu.dot_dimension_numbers<[2], [2], [1], [1], [0, 0, 0, 1, 1, 1], [0], [0]>} : vector<4x8x8xf32>, vector<4x8x8xf32>, vector<4x8x8xf32> -> vector<4x8x8xf32>
    "tpu.trace_stop"() : () -> ()
    %cst_12 = arith.constant dense<0xFF800000> : vector<4x8xf32>
    %18 = vector.multi_reduction <maximumf>, %17, %cst_12 [2] : vector<4x8x8xf32> to vector<4x8xf32>
    %19 = vector.shape_cast %18 : vector<4x8xf32> to vector<4x8x1xf32>
    %20 = vector.broadcast %19 : vector<4x8x1xf32> to vector<4x8x8xf32>
    %21 = arith.subf %17, %20 : vector<4x8x8xf32>
    %22 = math.exp %21 : vector<4x8x8xf32>
    %cst_13 = arith.constant dense<0.000000e+00> : vector<4x8xf32>
    %23 = vector.multi_reduction <add>, %22, %cst_13 [2] : vector<4x8x8xf32> to vector<4x8xf32>
    %24 = vector.shape_cast %23 : vector<4x8xf32> to vector<4x8x1xf32>
    %25 = tpu.reciprocal %24 {approx = true} : vector<4x8x1xf32> -> vector<4x8x1xf32>
    %26 = vector.broadcast %25 : vector<4x8x1xf32> to vector<4x8x8xf32>
    %27 = arith.mulf %22, %26 : vector<4x8x8xf32>
    %c0_14 = arith.constant 0 : index
    %c0_15 = arith.constant 0 : index
    %c0_16 = arith.constant 0 : index
    %28 = vector.load %arg15[%c0_14, %c0_15, %c0_16] : memref<4x8x8xf32, #tpu.memory_space<vmem>>, vector<4x8x8xf32>
    "tpu.trace_start"() <{level = 10 : i32, message = "hqk,hkd->hqd"}> : () -> ()
    %cst_17 = arith.constant dense<0.000000e+00> : vector<4x8x8xf32>
    %29 = tpu.matmul %27, %28, %cst_17 {dimension_numbers = #tpu.dot_dimension_numbers<[2], [1], [1], [2], [0, 0, 0, 1, 1, 2], [0], [0]>} : vector<4x8x8xf32>, vector<4x8x8xf32>, vector<4x8x8xf32> -> vector<4x8x8xf32>
    "tpu.trace_stop"() : () -> ()
    %30 = tpu.transpose %29, [1, 0, 2] : vector<4x8x8xf32> -> vector<8x4x8xf32>
    %31 = vector.shape_cast %30 : vector<8x4x8xf32> to vector<8x32xf32>
    %c0_18 = arith.constant 0 : index
    %c0_19 = arith.constant 0 : index
    %32 = vector.load %arg11[%c0_18, %c0_19] : memref<32x32xf32, #tpu.memory_space<vmem>>, vector<32x32xf32>
    %cst_20 = arith.constant dense<0.000000e+00> : vector<8x32xf32>
    %33 = tpu.matmul %31, %32, %cst_20 {dimension_numbers = #tpu.dot_dimension_numbers<[1], [0], [0], [1], [0, 0, 1, 1], [], []>} : vector<8x32xf32>, vector<32x32xf32>, vector<8x32xf32> -> vector<8x32xf32>
    %c0_21 = arith.constant 0 : index
    %c0_22 = arith.constant 0 : index
    %34 = vector.load %arg12[%c0_21, %c0_22] : memref<1x32xf32, #tpu.memory_space<vmem>>, vector<1x32xf32>
    %35 = vector.shape_cast %34 : vector<1x32xf32> to vector<32xf32>
    %36 = vector.shape_cast %35 : vector<32xf32> to vector<1x32xf32>
    %37 = vector.broadcast %36 : vector<1x32xf32> to vector<8x32xf32>
    %38 = arith.addf %33, %37 : vector<8x32xf32>
    %c0_23 = arith.constant 0 : index
    %c0_24 = arith.constant 0 : index
    %c0_25 = arith.constant 0 : index
    %39 = vector.load %arg13[%c0_23, %c0_24, %c0_25] : memref<1x8x32xf32, #tpu.memory_space<vmem>>, vector<1x8x32xf32>
    %40 = vector.shape_cast %39 : vector<1x8x32xf32> to vector<8x32xf32>
    %41 = vector.shape_cast %38 : vector<8x32xf32> to vector<1x8x32xf32>
    tpu.vector_store %arg13[%c0_23, %c0_24, %c0_25], %41 {strides = array<i32>} : memref<1x8x32xf32, #tpu.memory_space<vmem>>, vector<1x8x32xf32>,
    return
  }
  func.func @transform_0(%arg0: i32, %arg1: i32) -> (i32, i32, i32) {
    %c0_i32 = arith.constant 0 : i32
    %c0_i32_0 = arith.constant 0 : i32
    return %arg0, %arg1, %c0_i32 : i32, i32, i32
  }
  func.func @transform_1(%arg0: i32, %arg1: i32) -> (i32, i32, i32) {
    %c0_i32 = arith.constant 0 : i32
    %c0_i32_0 = arith.constant 0 : i32
    %c0_i32_1 = arith.constant 0 : i32
    return %arg0, %c0_i32, %c0_i32_0 : i32, i32, i32
  }
  func.func @transform_2(%arg0: i32, %arg1: i32) -> (i32, i32, i32) {
    %c0_i32 = arith.constant 0 : i32
    %c0_i32_0 = arith.constant 0 : i32
    %c0_i32_1 = arith.constant 0 : i32
    return %arg0, %c0_i32, %c0_i32_0 : i32, i32, i32
  }
  func.func @transform_3(%arg0: i32, %arg1: i32) -> (i32, i32) {
    %c0_i32 = arith.constant 0 : i32
    %c0_i32_0 = arith.constant 0 : i32
    %c0_i32_1 = arith.constant 0 : i32
    return %c0_i32, %c0_i32_0 : i32, i32
  }
  func.func @transform_4(%arg0: i32, %arg1: i32) -> (i32, i32) {
    %c0_i32 = arith.constant 0 : i32
    %c0_i32_0 = arith.constant 0 : i32
    %c0_i32_1 = arith.constant 0 : i32
    return %c0_i32, %c0_i32_0 : i32, i32
  }
  func.func @transform_5(%arg0: i32, %arg1: i32) -> (i32, i32) {
    %c0_i32 = arith.constant 0 : i32
    %c0_i32_0 = arith.constant 0 : i32
    %c0_i32_1 = arith.constant 0 : i32
    return %c0_i32, %c0_i32_0 : i32, i32
  }
  func.func @transform_6(%arg0: i32, %arg1: i32) -> (i32, i32) {
    %c0_i32 = arith.constant 0 : i32
    %c0_i32_0 = arith.constant 0 : i32
    %c0_i32_1 = arith.constant 0 : i32
    return %c0_i32, %c0_i32_0 : i32, i32
  }
  func.func @transform_7(%arg0: i32, %arg1: i32) -> (i32, i32) {
    %c0_i32 = arith.constant 0 : i32
    %c0_i32_0 = arith.constant 0 : i32
    %c0_i32_1 = arith.constant 0 : i32
    return %c0_i32, %c0_i32_0 : i32, i32
  }
  func.func @transform_8(%arg0: i32, %arg1: i32) -> (i32, i32) {
    %c0_i32 = arith.constant 0 : i32
    %c0_i32_0 = arith.constant 0 : i32
    %c0_i32_1 = arith.constant 0 : i32
    return %c0_i32, %c0_i32_0 : i32, i32
  }
  func.func @transform_9(%arg0: i32, %arg1: i32) -> (i32, i32) {
    %c0_i32 = arith.constant 0 : i32
    %c0_i32_0 = arith.constant 0 : i32
    %c0_i32_1 = arith.constant 0 : i32
    return %c0_i32, %c0_i32_0 : i32, i32
  }
  func.func @transform_10(%arg0: i32, %arg1: i32) -> (i32, i32) {
    %c0_i32 = arith.constant 0 : i32
    %c0_i32_0 = arith.constant 0 : i32
    %c0_i32_1 = arith.constant 0 : i32
    return %c0_i32, %c0_i32_0 : i32, i32
  }
  func.func @transform_11(%arg0: i32, %arg1: i32) -> (i32, i32, i32) {
    %c0_i32 = arith.constant 0 : i32
    %c0_i32_0 = arith.constant 0 : i32
    return %arg0, %arg1, %c0_i32 : i32, i32, i32
  }
}

</mosaic_0001>

<bundles_post_ra>
// kernel: tpu_custom_call.1
= control target key start
LH: loop header
LB: loop body
LE: loop exit
PB: predicated region body
PF: predicated region fallthrough
CT: control target
= control target key end

     0   :  { %s2654_s0 = inlined_call_operand.hbm [shape: f32[2,8,32], index: 0, kind: input, shape index: {}]   ;;  %s2655_s1 = inlined_call_operand.hbm [shape: f32[2,8,32], index: 1, kind: input, shape index: {}]   ;;  %s2656_s2 = inlined_call_operand.hbm [shape: f32[2,8,32], index: 2, kind: input, shape index: {}]   ;;  %s2657_s3 = inlined_call_operand.hbm [shape: f32[32,32], index: 3, kind: input, shape index: {}]   ;;  %s2658_s4 = inlined_call_operand.vmem [shape: f32[1,32], index: 4, kind: input, shape index: {}]   ;;  %s2659_s5 = inlined_call_operand.hbm [shape: f32[32,32], index: 5, kind: input, shape index: {}]   ;;  %s2660_s6 = inlined_call_operand.vmem [shape: f32[1,32], index: 6, kind: input, shape index: {}]   ;;  %s2661_s7 = inlined_call_operand.hbm [shape: f32[32,32], index: 7, kind: input, shape index: {}]   ;;  %s2662_s8 = inlined_call_operand.vmem [shape: f32[1,32], index: 8, kind: input, shape index: {}]   ;;  %s2663_s9 = inlined_call_operand.hbm [shape: f32[32,32], index: 9, kind: input, shape index: {}]   ;;  %s2664_s10 = inlined_call_operand.vmem [shape: f32[1,32], index: 10, kind: input, shape index: {}]   ;;  %s2665_s11 = inlined_call_operand.hbm [shape: f32[2,8,32], index: 11, kind: output, shape index: {}]  }
   0x1   :  { %2679 = sst [smem:[#allocation29_spill]] %s2654_s0 }
   0x2   :  { %2680 = sst [smem:[#allocation30_spill]] %s2655_s1 }
   0x3   :  { %2681 = sst [smem:[#allocation31_spill]] %s2657_s3 }
   0x4   :  { %2682 = sst [smem:[#allocation32_spill]] %s2659_s5 }
   0x5   :  { %2683 = sst [smem:[#allocation33_spill]] %s2661_s7 }
   0x6   :  { %2684 = sst [smem:[#allocation34_spill]] %s2663_s9 }
   0x7   :  { %2685 = sst [smem:[#allocation35_spill]] %s2664_s10 }
   0x8   :  { %16 = vsyncpa [#allocation5], 0 }
   0x9   :  { %18 = vsyncpa [#allocation5 + $0x1], 0 }
   0xa   :  { %19 = vsyncpa [#allocation8], 0 }
   0xb   :  { %21 = vsyncpa [#allocation8 + $0x1], 0 }
   0xc   :  { %22 = vsyncpa [#allocation11], 0 }
   0xd   :  { %23 = vsyncpa [#allocation14], 0 }
   0xe   :  { %24 = vsyncpa [#allocation6], 0 }
   0xf   :  { %26 = vsyncpa [#allocation6 + $0x1], 0  ;;  %s2188_s17 = smov 0   ;;  %s2190_s18 = smov 0  }
  0x10   :  { %s2192_s19 = smov 0   ;;  %s2194_s20 = smov 0  }
  0x11   :  { %s2196_s21 = smov 0   ;;  %s2198_s22 = smov 0  }
  0x12 LB: > { %2686 = sst [smem:[#allocation22_spill]] %s2092_s17  ;;  %s2219_s23 = sadd.s32 4294967295, %s2112_s22   ;;  %s2112_s22 = sphi %s2198_s22, %s32_s22   ;;  %s2108_s21 = sphi %s2196_s21, %s2720_s21   ;;  %s2104_s20 = sphi %s2194_s20, %s2715_s20   ;;  %s2100_s19 = sphi %s2192_s19, %s2719_s19   ;;  %s2096_s18 = sphi %s2190_s18, %s2718_s18   ;;  %s2092_s17 = sphi %s2188_s17, %s2717_s17  }
  0x13   : > { %2687 = sst [smem:[#allocation23_spill]] %s2108_s21  ;;  %p1624_p0 = scmp.ge.s32.totalorder %s2112_s22, 1 }
  0x14   : > { %2688 = sst [smem:[#allocation24_spill]] %s2112_s22  ;;  %p67_p1 = scmp.eq.s32.totalorder %s2219_s23, 0 }
  0x15   : > { %p325_p2 = scmp.lt.s32.totalorder %s2112_s22, 3  ;;  %s2689_s3 = sld [smem:[#allocation31_spill]] }
  0x16   : > { %s2114_s28 = smov [#allocation10]   ;;  %p1629_p6 = scmp.ge.s32.totalorder %s2112_s22, 2 }
  0x17   : > { %p2227_p3 = pnand %p1624_p0, %p325_p2  ;;  %s338_s29 = sshll.u32 %s2114_s28, 4  ;;  %s339_s29 = int_to_ptr.vmem [resolvable:$true] %s338_s29 }
  0x18   : > { %s2692_s7 = sld [smem:[#allocation33_spill]]  ;;  %s2666_s15 = smov 128  }
  0x19   : > { %p1689_p4 = pneg %p2227_p3  ;;  %s2668_s16 = smov 8  }
  0x1a   : > { %s2117_s24 = smov [#allocation13]   ;;  %s1623_s28 = sadd.s32 4294967294, %s2112_s22  }
  0x1b   : > { %s336_s26 = sshll.u32 %s2689_s3, 4  ;;  %p2235_p5 = pnand %p1689_p4, %p67_p1  ;;  %s337_s26 = int_to_ptr.hbm [resolvable:$true] %s336_s26 }
  0x1c   : > { %s372_s25 = sshll.u32 %s2117_s24, 4  ;;  %s44_s12 = sadd.s32 1, %s2108_s21  ;;  %s373_s25 = int_to_ptr.vmem [resolvable:$true] %s372_s25 }
  0x1d   : > { %1692 = dma.hbm_to_vmem [thread:$0]  (!%p2235_p5), %s337_s26, 512, %s339_s29, [#allocation11], %s2666_s15, %s2666_s15, %s2668_s16  }
  0x1e   : > { %s370_s14 = sshll.u32 %s2692_s7, 4  ;;  %p46_p7 = scmp.ge.s32.totalorder %s44_s12, 2  ;;  %s371_s14 = int_to_ptr.hbm [resolvable:$true] %s370_s14 }
  0x1f   : > { %1698 = dma.hbm_to_vmem [thread:$0]  (!%p2235_p5), %s371_s14, 512, %s373_s25, [#allocation14], %s2666_s15, %s2666_s15, %s2668_s16  }
  0x20   : > { %s53_s13 = sadd.s32 1, %s2100_s19  ;;  %p60_p8 = scmp.ne.s32.totalorder %s2100_s19, %s2096_s18 }
  0x21   : > { %p61_p9 = scmp.eq.s32.totalorder %s2112_s22, 0  ;;  %s2722_s12 = smov (%p46_p7, %s44_s12), 0 }
  0x22   : > { %2693 = sst [smem:[#allocation25_spill]] %s2722_s12  ;;  %p66_p11 = scmp.ne.s32.totalorder %s2096_s18, %s2092_s17 }
  0x23   : > { %p2261_p10 = por %p61_p9, %p60_p8  ;;  %s48_s29 = ssub.s32 %s2108_s21, %s2722_s12 }
  0x24   : > { %p312_p12 = scmp.eq.s32.totalorder %s2219_s23, 1  ;;  %p51_p13 = scmp.eq.s32.totalorder %s48_s29, 0 }
  0x25   : > { %p2272_p0 = por %p67_p1, %p66_p11  ;;  %p318_p4 = scmp.eq.s32.totalorder %s1623_s28, 1 }
  0x26   : > { %p2276_p2 = por %p312_p12, %p60_p8  ;;  %p1720_p9 = scmp.lt.s32.totalorder %s2112_s22, 2 }
  0x27   : > { %s2281_s25 = scalar_select %p51_p13, %s2100_s19, %s53_s13  }
  0x28   : > { %s2696_s24 = scalar_select %p2276_p2, 1, 0 }
  0x29   : > { %2698 = sst [smem:[#allocation27_spill]] %s2281_s25  ;;  %p2283_p7 = por %p318_p4, %p66_p11 }
  0x2a   : > { %2697 = sst [smem:[#allocation26_spill]] %s2696_s24  ;;  %s2674_s16 = sand.u32 1, %s2100_s19  }
  0x2b   : > { %s2699_s15 = scalar_select %p2283_p7, 1, 0 }
  0x2c   : > { %s2290_s3 = sshll.u32 %s2108_s21, 3  ;;  %s2294_s29 = sshll.u32 %s2674_s16, 3 }
  0x2d   : > { %2700 = sst [smem:[#allocation28_spill]] %s2699_s15  ;;  %p2298_p8 = pnand %p1720_p9, %p2261_p10 }
  0x2e   : > { %s426_s28 = sand.u32 1, %s2112_s22   ;;  %s2702_s1 = sld [smem:[#allocation30_spill]] }
  0x2f   : > { %s430_s15 = scalar_lea.vmem [#allocation7], %s2294_s29  ;;  %s2703_s5 = sld [smem:[#allocation32_spill]] }
  0x30   : > { %s438_s21 = sshll.u32 %s430_s15, 4  ;;  %s427_s24 = scalar_lea.sflag [#allocation8], %s426_s28  ;;  %s439_s21 = int_to_ptr.vmem [resolvable:$true] %s438_s21 }
  0x31   : > { %s2118_s22 = smov [#allocation12]   ;;  %s2704_s9 = sld [smem:[#allocation34_spill]] }
  0x32   : > { %s355_s12 = sshll.u32 %s2118_s22, 4  ;;  %s2706_s16 = smov 128   ;;  %s356_s12 = int_to_ptr.vmem [resolvable:$true] %s355_s12 }
  0x33   : > { %s2119_s28 = smov [#allocation15]   ;;  %s2707_s0 = sld [smem:[#allocation29_spill]] }
  0x34   : > { %s434_s25 = scalar_lea.hbm %s2702_s1, %s2290_s3  ;;  %s410_s13 = scalar_lea.vmem [#allocation4], %s2294_s29 }
  0x35   : > { %s436_s17 = sshll.u32 %s434_s25, 4  ;;  %s353_s10 = sshll.u32 %s2703_s5, 4  ;;  %s437_s17 = int_to_ptr.hbm [resolvable:$true] %s436_s17  ;;  %s354_s10 = int_to_ptr.hbm [resolvable:$true] %s353_s10 }
  0x36   : > { %1708 = dma.hbm_to_vmem [thread:$0]  (!%p2298_p8), %s437_s17, 128, %s439_s21, %s427_s24  }
  0x37   : > { %s387_s15 = sshll.u32 %s2704_s9, 4  ;;  %s2705_s25 = smov 8   ;;  %s388_s15 = int_to_ptr.hbm [resolvable:$true] %s387_s15 }
  0x38   : > { %1695 = dma.hbm_to_vmem [thread:$0]  (!%p2235_p5), %s354_s10, 512, %s356_s12, [#allocation11], %s2706_s16, %s2706_s16, %s2705_s25  }
  0x39   : > { %s389_s17 = sshll.u32 %s2119_s28, 4  ;;  %s415_s22 = scalar_lea.hbm %s2707_s0, %s2290_s3  ;;  %s390_s17 = int_to_ptr.vmem [resolvable:$true] %s389_s17 }
  0x3a   : > { %1701 = dma.hbm_to_vmem [thread:$0]  (!%p2235_p5), %s388_s15, 512, %s390_s17, [#allocation14], %s2706_s16, %s2706_s16, %s2705_s25  }
  0x3b   : > { %s417_s1 = sshll.u32 %s415_s22, 4  ;;  %s419_s5 = sshll.u32 %s410_s13, 4  ;;  %s418_s1 = int_to_ptr.hbm [resolvable:$true] %s417_s1  ;;  %s420_s5 = int_to_ptr.vmem [resolvable:$true] %s419_s5 }
  0x3c   : > { %s2708_s9 = sand.u32 1, %s2100_s19   ;;  %s453_s21 = scalar_lea.hbm %s2656_s2, %s2290_s3 }
  0x3d   : > { %s407_s10 = scalar_lea.sflag [#allocation5], %s2708_s9  ;;  %s455_s26 = sshll.u32 %s453_s21, 4  ;;  %s456_s26 = int_to_ptr.hbm [resolvable:$true] %s455_s26 }
  0x3e   : > { %1705 = dma.hbm_to_vmem [thread:$0]  (!%p2298_p8), %s418_s1, 128, %s420_s5, %s407_s10  }
  0x3f   : > { %s449_s0 = scalar_lea.vmem [#allocation9], %s2294_s29  ;;  %466 = sbr.rel (%p2227_p3) target bundleno = 1176 (0x498), region = 64 }
  0x40   : > { %s457_s30 = sshll.u32 %s449_s0, 4  ;;  %s2345_s15 = sand.u32 (!%p2227_p3), 1, %s2096_s18   ;;  %s458_s30 = int_to_ptr.vmem [resolvable:$true] %s457_s30 }
  0x41   : > { %1711 = dma.hbm_to_vmem [thread:$0]  (!%p2298_p8), %s456_s26, 128, %s458_s30, %s427_s24  }
  0x42   : > { %s2348_s5 = sshll.u32 (!%p2227_p3), %s2345_s15, 3  ;;  %s469_s3 = scalar_lea.sflag (!%p2227_p3), [#allocation5], %s2345_s15 }
  0x43   : > { %s472_s9 = scalar_lea.vmem (!%p2227_p3), [#allocation4], %s2348_s5 }
  0x44   : > { %2071 = dma.done.wait (%p2272_p0), %s469_s3, 128  }
  0x45   : > { %2073 = vsyncadd (%p2272_p0), %s469_s3, 4294967168  ;;  %s478_s0 = sand.u32 1, %s2219_s23   ;;  %s482_s27 = scalar_lea.vmem [#allocation7], %s2348_s5 }
  0x46   : > { %s479_s7 = scalar_lea.sflag [#allocation8], %s478_s0 }
  0x47   : > { %2075 = dma.done.wait (%p2272_p0), %s479_s7, 256  }
  0x48   : > { %2077 = vsyncadd (%p2272_p0), %s479_s7, 4294967040  ;;  %s492_s24 = scalar_lea.vmem [#allocation9], %s2348_s5 }
  0x49   : > { %2079 = dma.done.wait (%p67_p1), [#allocation11], 1024  }
  0x4a   : > { %2081 = vsyncadd (%p67_p1), [#allocation11], 4294966272 }
  0x4b   : > { %2083 = dma.done.wait (%p67_p1), [#allocation14], 1024  }
  0x4c   : > { %2085 = vsyncadd (%p67_p1), [#allocation14], 4294966272  ;;  %v571_v0 = vld [vmem:[#allocation12 + $0x18] sm:$0xff]  ;;  %v570_v2 = vld [vmem:[#allocation12 + $0x10] sm:$0xff]  ;;  %vm576_vm0 = vcmask 261120   ;;  %s2120_s29 = smov 104  }
  0x4d   : > { %v885_v1 = vld [vmem:[#allocation10 + $0x18] sm:$0xff]  ;;  %592 = vmatpush.msra.mxu0 %v571_v0  ;;  %v884_v3 = vld [vmem:[#allocation10 + $0x10] sm:$0xff]  ;;  %v569_v4 = vld [vmem:[#allocation12 + $0x8] sm:$0xff]  ;;  %s2121_s25 = smov 120   ;;  %s2122_s22 = smov 112   ;;  %vm642_vm1 = vcmask 1047556  }
  0x4e   : > { %906 = vmatpush.msra.mxu2 %v885_v1  ;;  %v883_v5 = vld [vmem:[#allocation10 + $0x8] sm:$0xff]  ;;  %v568_v6 = vld [vmem:[#allocation12] sm:$0xff]  ;;  %v881_v9 = vld [vmem:[%s472_s9] sm:$0xff]  ;;  %v2123_v18 = vmov 1983009808   ;;  %vm752_vm2 = vcmask 64512  }
  0x4f   : > { %593 = vmatpush.msra.mxu0 %v570_v2  ;;  %v882_v7 = vld [vmem:[#allocation10] sm:$0xff]  ;;  %v1788_v10 = vld [vmem:[%s2660_s6] ss:$0 sm:$0xff]  ;;  %v647_v19 = vunpack.c.l.s4 %v2123_v18  ;;  %v603_v26 = vld [vmem:[#allocation13 + $0x18] sm:$0xff]  ;;  %v2124_v33 = vmov 1934713408  }
  0x50   : > { %907 = vmatpush.msra.mxu2 %v884_v3  ;;  %v566_v8 = vld [vmem:[%s482_s27] sm:$0xff]  ;;  %v1789_v13 = vld [vmem:[%s2658_s4] ss:$0 sm:$0xff]  ;;  %623 = vmatpush.msra.mxu1 %v603_v26  ;;  %v671_v34 = vunpack.c.l.s4 %v2124_v33  ;;  %s2125_s10 = smov 24   ;;  %s2126_s12 = smov 16   ;;  %vm1408_vm3 = vcmask 130048  }
  0x51   : > { %594 = vmatpush.msra.mxu0 %v569_v4  ;;  %v2390_v27 = vunpack.c.0.s8 %v647_v19  ;;  %v602_v32 = vld [vmem:[#allocation13 + $0x10] sm:$0xff]  ;;  %v601_v37 = vld [vmem:[#allocation13 + $0x8] sm:$0xff]  ;;  %v600_v38 = vld [vmem:[#allocation13] sm:$0xff]  ;;  %s2127_s28 = smov 8   ;;  %vm1410_vm4 = vcmask 195584   ;;  %s1662_s21 = sshll.u32 %s2104_s20, 3 }
  0x52   : > { %908 = vmatpush.msra.mxu2 %v883_v5  ;;  %624 = vmatpush.msra.mxu1 %v602_v32  ;;  %v567_v42 = vld [vmem:[%s492_s24] sm:$0xff]  ;;  %v2403_v46 = vunpack.c.0.s8 %v671_v34  ;;  %s1456_s9 = scalar_lea.hbm %s2665_s11, %s1662_s21  ;;  %s2710_s27 = sld [smem:[#allocation35_spill]] }
  0x53   : > { %595 = vmatpush.msra.mxu0 %v568_v6  ;;  %s561_s24 = scalar_lea.vmem [#allocation16], %s2348_s5  ;;  %s1460_s14 = sshll.u32 %s1456_s9, 4  ;;  %s1461_s14 = int_to_ptr.hbm [resolvable:$true] %s1460_s14 }
  0x54   : > { %909 = vmatpush.msra.mxu2 %v882_v7  ;;  %1645 = vmatmul.msk.f32.vlgmr.msra.gmra.mxu0 %vm576_vm0, %v566_v8  ;;  %s1458_s23 = sshll.u32 %s561_s24, 4  ;;  %s2032_s20 = sshra.s32 %s1461_s14, 4  ;;  %s1459_s23 = int_to_ptr.vmem [resolvable:$true] %s1458_s23  ;;  %s2033_s20 = int_to_ptr.hbm [resolvable:$true] %s2032_s20 }
  0x55   : > { %1647 = vmatmul.msk.f32.vlgmr.msra.gmra.mxu2 %vm576_vm0, %v881_v9  ;;  %625 = vmatpush.msra.mxu1 %v601_v37  ;;  %s2038_s5 = scalar_lea.hbm %s2665_s11, 16  ;;  %p2039_p10 = scmp.lt.s32.totalorder %s2033_s20, %s2665_s11 }
  0x57   : > { %626 = vmatpush.msra.mxu1 %v600_v38 }
  0x58   : > { %1646 = vmatmul.msk.f32.vlgmr.msra.gmra.mxu1 %vm576_vm0, %v567_v42 }
  0xd1   : > { %v597_v11 = vpop.f32.mrf.mxu0 }
  0xd2   : > { %v2376_v12 = vadd.f32 %v1788_v10, %v597_v11 }
  0xd4   : > { %638 = vrot.lane.b32.xlu1 %v2376_v12, %s2120_s29  ;;  %632 = vrot.lane.b32.xlu0 %v2376_v12, %s2121_s25  ;;  %v644_v44 = vrot.slane %v2376_v12, 4 }
  0xd8   : > { %v911_v14 = vpop.f32.mrf.mxu2 }
  0xd9   : > { %v912_v15 = vadd.f32 %v1789_v13, %v911_v14 }
  0xdb   : > { %v914_v16 = vmul.f32 0.35355338, %v912_v15 }
  0xdc   : > { %635 = vrot.lane.b32.xlu0 %v2376_v12, %s2122_s22 }
  0xdd   : > { %919 = vrot.lane.b32.xlu2 %v914_v16, %s2122_s22  ;;  %916 = vrot.lane.b32.xlu1 %v914_v16, %s2121_s25  ;;  %v928_v24 = vrot.slane %v914_v16, 4 }
  0xe5   : > { %922 = vrot.lane.b32.xlu2 %v914_v16, %s2120_s29 }
 0x137   : > { %v920_v17 = vpop.permute.xlu2 %919 }
 0x138   : > { %v925_v20 = vrot.slane %v920_v17, 4  ;;  %v929_v29 = vsel %vm642_vm1, %v920_v17, %v928_v24 }
 0x139   : > { %v937_v39 = vperm.slane %v929_v29, %v2390_v27 }
 0x13a   : > { %v927_v28 = vsel %vm642_vm1, %v925_v20, %v914_v16 }
 0x13b   : > { %v933_v35 = vperm.slane %v927_v28, %v2390_v27  ;;  %v964_v54 = vrot.slane %v937_v39, 4 }
 0x13d   : > { %v952_v50 = vrot.slane %v933_v35, 4 }
 0x13f   : > { %v923_v30 = vpop.permute.xlu2 %922 }
 0x140   : > { %v938_v40 = vrot.slane %v923_v30, 4 }
 0x146   : > { %v639_v21 = vpop.permute.xlu1 %638  ;;  %v633_v22 = vpop.permute.xlu0 %632 }
 0x147   : > { %v656_v23 = vrot.slane %v633_v22, 4  ;;  %v654_v25 = vrot.slane %v639_v21, 4 }
 0x149   : > { %v657_v31 = vsel %vm642_vm1, %v639_v21, %v656_v23  ;;  %v655_v36 = vsel %vm642_vm1, %v654_v25, %v633_v22 }
 0x14a   : > { %v665_v41 = vperm.slane %v657_v31, %v2390_v27  ;;  %v661_v45 = vperm.slane %v655_v36, %v2390_v27 }
 0x14c   : > { %v678_v55 = vrot.slane %v665_v41, 4  ;;  %v666_v62 = vrot.slane %v661_v45, 4 }
 0x14e   : > { %v636_v49 = vpop.permute.xlu0 %635 }
 0x14f   : > { %v917_v43 = vpop.permute.xlu1 %916  ;;  %v641_v52 = vrot.slane %v636_v49, 4  ;;  %v645_v53 = vsel %vm642_vm1, %v636_v49, %v644_v44 }
 0x150   : > { %v939_v47 = vsel %vm642_vm1, %v938_v40, %v917_v43  ;;  %v940_v48 = vrot.slane %v917_v43, 4  ;;  %v653_v57 = vperm.slane %v645_v53, %v2390_v27 }
 0x151   : > { %v945_v51 = vperm.slane %v939_v47, %v2390_v27  ;;  %v643_v61 = vsel %vm642_vm1, %v641_v52, %v2376_v12 }
 0x152   : > { %v941_v56 = vsel %vm642_vm1, %v923_v30, %v940_v48  ;;  %v649_v0 = vperm.slane %v643_v61, %v2390_v27  ;;  %v680_v1 = vrot.slane %v653_v57, 4  ;;  %v679_v5 = vsel %vm642_vm1, %v678_v55, %v653_v57 }
 0x153   : > { %v949_v58 = vperm.slane %v941_v56, %v2390_v27  ;;  %v950_v59 = vrot.slane %v945_v51, 4  ;;  %v953_v60 = vsel %vm642_vm1, %v945_v51, %v952_v50  ;;  %v685_v15 = vperm.slane %v679_v5, %v2403_v46 }
 0x154   : > { %v961_v63 = vperm.slane %v953_v60, %v2403_v46  ;;  %v667_v9 = vsel %vm642_vm1, %v666_v62, %v649_v0  ;;  %v668_v11 = vrot.slane %v649_v0, 4  ;;  %v681_v12 = vsel %vm642_vm1, %v665_v41, %v680_v1 }
 0x155   : > { %v951_v2 = vsel %vm642_vm1, %v950_v59, %v933_v35  ;;  %v962_v3 = vrot.slane %v949_v58, 4  ;;  %v965_v4 = vsel %vm642_vm1, %v949_v58, %v964_v54  ;;  %v673_v17 = vperm.slane %v667_v9, %v2403_v46 }
 0x156   : > { %v957_v6 = vperm.slane %v951_v2, %v2403_v46  ;;  %v973_v7 = vperm.slane %v965_v4, %v2403_v46  ;;  %v976_v8 = vrot.slane %v961_v63, 4  ;;  %v669_v16 = vsel %vm642_vm1, %v661_v45, %v668_v11 }
 0x157   : > { %v963_v10 = vsel %vm642_vm1, %v962_v3, %v937_v39  ;;  %v689_v18 = vperm.slane %v681_v12, %v2403_v46  ;;  %v677_v23 = vperm.slane %v669_v16, %v2403_v46  ;;  %v694_v26 = vrot.slane %v685_v15, 4 }
 0x158   : > { %v969_v13 = vperm.slane %v963_v10, %v2403_v46  ;;  %v980_v14 = vrot.slane %v973_v7, 4  ;;  %v974_v19 = vrot.slane %v957_v6, 4  ;;  %v977_v20 = vsel %vm642_vm1, 0.0, %v976_v8 }
 0x159   : > { %v982_v24 = vsel %vm642_vm1, %v976_v8, %v957_v6  ;;  %v696_v28 = vrot.slane %v689_v18, 4  ;;  %v987_v29 = vrot.slane %v977_v20, 4  ;;  %v690_v30 = vrot.slane %v673_v17, 4 }
 0x15a   : > { %v978_v21 = vrot.slane %v969_v13, 4  ;;  %v981_v22 = vsel %vm642_vm1, 0.0, %v980_v14  ;;  %v692_v31 = vrot.slane %v677_v23, 4  ;;  %v975_v33 = vsel %vm642_vm1, 0.0, %v974_v19 }
 0x15b   : > { %v998_v25 = vrot.slane %v981_v22, 4  ;;  %v993_v34 = vsel %vm642_vm1, %v980_v14, %v969_v13  ;;  %v697_v35 = vsel %vm642_vm1, 0.0, %v696_v28  ;;  %v709_v36 = vsel %vm642_vm1, %v696_v28, %v685_v15 }
 0x15c   : > { %v979_v32 = vsel %vm642_vm1, 0.0, %v978_v21  ;;  %v693_v37 = vsel %vm642_vm1, 0.0, %v692_v31  ;;  %v698_v38 = vsel %vm642_vm1, %v692_v31, %v673_v17  ;;  %v713_v39 = vperm.slane %v709_v36, %v2390_v27 }
 0x15d   : > { %v714_v40 = vrot.slane %v697_v35, 4  ;;  %v695_v41 = vsel %vm642_vm1, 0.0, %v694_v26  ;;  %v702_v42 = vperm.slane %v698_v38, %v2390_v27  ;;  %v703_v43 = vrot.slane %v693_v37, 4  ;;  %v628_v37 = vpop.f32.mrf.mxu1 }
 0x15e   : > { %v999_v44 = vsel %vm642_vm1, %v998_v25, %v979_v32  ;;  %v691_v45 = vsel %vm642_vm1, 0.0, %v690_v30  ;;  %v734_v48 = vrot.slane %v713_v39, 4  ;;  %v997_v49 = vperm.slane %v993_v34, %v2390_v27 }
 0x15f   : > { %v715_v47 = vsel %vm642_vm1, %v714_v40, %v695_v41  ;;  %v986_v50 = vperm.slane %v982_v24, %v2390_v27  ;;  %v704_v51 = vsel %vm642_vm1, %v703_v43, %v691_v45  ;;  %v722_v53 = vrot.slane %v702_v42, 4 }
 0x160   : > { %v719_v52 = vperm.slane %v715_v47, %v2390_v27  ;;  %v708_v54 = vperm.slane %v704_v51, %v2390_v27  ;;  %v988_v55 = vsel %vm642_vm1, %v987_v29, %v975_v33  ;;  %v1003_v56 = vperm.slane %v999_v44, %v2390_v27  ;;  %v1790_v47 = vld [vmem:[%s2662_s8] ss:$0 sm:$0xff] }
 0x161   : > { %v1018_v62 = vrot.slane %v997_v49, 4  ;;  %v992_v1 = vperm.slane %v988_v55, %v2390_v27  ;;  %v1006_v2 = vrot.slane %v986_v50, 4 }
 0x162   : > { %v732_v57 = vrot.slane %v719_v52, 4  ;;  %v735_v58 = vsel %vm642_vm1, %v719_v52, %v734_v48  ;;  %v720_v59 = vrot.slane %v708_v54, 4  ;;  %v723_v60 = vsel %vm642_vm1, %v708_v54, %v722_v53 }
 0x163   : > { %v743_v61 = vperm.slane %v735_v58, %v2403_v46  ;;  %v731_v63 = vperm.slane %v723_v60, %v2403_v46  ;;  %v1016_v6 = vrot.slane %v1003_v56, 4  ;;  %v1019_v11 = vsel %vm642_vm1, %v1003_v56, %v1018_v62 }
 0x164   : > { %v733_v0 = vsel %vm642_vm1, %v732_v57, %v713_v39  ;;  %v721_v3 = vsel %vm642_vm1, %v720_v59, %v702_v42  ;;  %v1007_v14 = vsel %vm642_vm1, %v992_v1, %v1006_v2  ;;  %v1027_v18 = vperm.slane %v1019_v11, %v2403_v46 }
 0x165   : > { %v739_v4 = vperm.slane %v733_v0, %v2403_v46  ;;  %v748_v5 = vrot.slane %v743_v61, 4  ;;  %v727_v7 = vperm.slane %v721_v3, %v2403_v46  ;;  %v750_v8 = vrot.slane %v731_v63, 4 }
 0x166   : > { %v1017_v16 = vsel %vm642_vm1, %v1016_v6, %v997_v49  ;;  %v1015_v19 = vperm.slane %v1007_v14, %v2403_v46  ;;  %v1004_v20 = vrot.slane %v992_v1, 4  ;;  %v1032_v22 = vrot.slane %v1027_v18, 4 }
 0x167   : > { %v744_v9 = vrot.slane %v739_v4, 4  ;;  %v749_v10 = vsel %vm642_vm1, %v748_v5, %v731_v63  ;;  %v746_v12 = vrot.slane %v727_v7, 4  ;;  %v751_v13 = vsel %vm642_vm1, %v743_v61, %v750_v8 }
 0x168   : > { %755 = vst.msk [vmem:[#allocation2 + $0x10] sm:$0xff] %vm752_vm2, %v749_v10  ;;  %v1023_v21 = vperm.slane %v1017_v16, %v2403_v46  ;;  %v1005_v24 = vsel %vm642_vm1, %v1004_v20, %v986_v50  ;;  %v1034_v25 = vrot.slane %v1015_v19, 4  ;;  %v1033_v30 = vsel %vm642_vm1, %v1032_v22, %v1015_v19 }
 0x169   : > { %v745_v15 = vsel %vm642_vm1, %v744_v9, %v727_v7  ;;  %756 = vst.msk [vmem:[#allocation2 + $0x18] sm:$0xff] %vm752_vm2, %v751_v13  ;;  %v747_v17 = vsel %vm642_vm1, %v739_v4, %v746_v12  ;;  %v1011_v32 = vperm.slane %v1005_v24, %v2403_v46  ;;  %v629_v48 = vadd.f32 %v1790_v47, %v628_v37 }
 0x16a   : > { %753 = vst.msk [vmem:[#allocation2] sm:$0xff] %vm752_vm2, %v745_v15  ;;  %v1028_v28 = vrot.slane %v1023_v21, 4  ;;  %v1035_v33 = vsel %vm642_vm1, %v1027_v18, %v1034_v25 }
 0x16b   : > { %754 = vst.msk [vmem:[#allocation2 + $0x8] sm:$0xff] %vm752_vm2, %v747_v17  ;;  %v1030_v35 = vrot.slane %v1011_v32, 4  ;;  %v769_v12 = vrot.slane %v629_v48, 4 }
 0x16c   : > { %v1029_v34 = vsel %vm642_vm1, %v1028_v28, %v1011_v32 }
 0x16d   : > { %v1031_v36 = vsel %vm642_vm1, %v1023_v21, %v1030_v35 }
 0x16f   : > { %v1038_v23 = vld [vmem:[#allocation2 + $0x10] sm:$0xff] }
 0x170   : > { %1652 = vmatpush.xpose.msk.msrb.mxu0 %vm752_vm2, %v1038_v23  ;;  %v1039_v26 = vld [vmem:[#allocation2 + $0x18] sm:$0xff] }
 0x171   : > { %v1036_v29 = vld [vmem:[#allocation2] sm:$0xff]  ;;  %1654 = vmatpush.xpose.msk.msrb.mxu1 %vm752_vm2, %v1039_v26 }
 0x172   : > { %1648 = vmatpush.xpose.msk.msra.mxu3 %vm752_vm2, %v1036_v29  ;;  %v1037_v31 = vld [vmem:[#allocation2 + $0x8] sm:$0xff] }
 0x173   : > { %1653 = vmatmul.msk.f32.vlgmr.msrb.gmra.mxu0 %vm752_vm2, %v1033_v30 }
 0x174   : > { %1655 = vmatmul.msk.f32.vlgmr.msrb.gmra.mxu1 %vm752_vm2, %v1035_v33 }
 0x175   : > { %1649 = vmatmul.msk.f32.vlgmr.msra.gmra.mxu3 %vm752_vm2, %v1029_v34 }
 0x176   : > { %1650 = vmatpush.xpose.msk.msrb.mxu3 %vm752_vm2, %v1037_v31 }
 0x17d   : > { %1651 = vmatmul.msk.f32.vlgmr.msrb.gmra.mxu3 %vm752_vm2, %v1031_v36 }
 0x1f0   : > { %v1116_v38 = vpop.f32.mrf.mxu0 }
 0x1f1   : > { %v1151_v39 = vsel %vm752_vm2, %v1116_v38, -inf  ;;  %v1142_v40 = vpop.f32.mrf.mxu1 }
 0x1f2   : > { %1152 = vmax.xlane.f32.xlu2 %v1151_v39  ;;  %v1154_v42 = vsel %vm752_vm2, %v1142_v40, -inf }
 0x1f8   : > { %v1064_v41 = vpop.f32.mrf.mxu3 }
 0x1f9   : > { %v1145_v43 = vsel %vm752_vm2, %v1064_v41, -inf }
 0x1fa   : > { %1155 = vmax.xlane.f32.xlu2 %v1154_v42  ;;  %1146 = vmax.xlane.f32.xlu0 %v1145_v43 }
 0x200   : > { %v1090_v44 = vpop.f32.mrf.mxu3 }
 0x201   : > { %v1148_v45 = vsel %vm752_vm2, %v1090_v44, -inf }
 0x202   : > { %1149 = vmax.xlane.f32.xlu1 %v1148_v45 }
 0x20e   : > { %758 = vrot.lane.b32.xlu0 %v629_v48, %s2121_s25  ;;  %s2034_s25 = scalar_lea.hbm %s2033_s20, 8 }
 0x20f   : > { %p2035_p1 = scmp.ne.s32.totalorder %s2033_s20, %s2034_s25  ;;  %p2040_p11 = scmp.lt.s32.totalorder %s2038_s5, %s2034_s25 }
 0x211   : > { %p2036_p3 = pnand %p2035_p1, %p2276_p2  ;;  %p2041_p12 = por %p2040_p11, %p2039_p10 }
 0x212   : > { %764 = vrot.lane.b32.xlu2 %v629_v48, %s2120_s29  ;;  %s1445_s29 = scalar_lea.sflag [#allocation6], %s2345_s15 }
 0x213   : > { %p2037_p5 = pneg %p2036_p3 }
 0x215   : > { %p2042_p13 = pnand %p2041_p12, %p2037_p5 }
 0x21b   : > { %761 = vrot.lane.b32.xlu1 %v629_v48, %s2122_s22 }
 0x265   : > { %v1153_v49 = vpop.xlane.xlu2 %1152 }
 0x266   : > { %v1159_v50 = vsub.f32 %v1116_v38, %v1153_v49 }
 0x268   : > { %v1165_v51 = vmul.f32 1.442695, %v1159_v50 }
 0x26a   : > { %1792 = vpow2.f32 %v1165_v51 }
 0x26d   : > { %v1147_v52 = vpop.xlane.xlu0 %1146  ;;  %v1156_v53 = vpop.xlane.xlu2 %1155 }
 0x26e   : > { %v1157_v54 = vsub.f32 %v1064_v41, %v1147_v52  ;;  %v1160_v57 = vsub.f32 %v1142_v40, %v1156_v53 }
 0x270   : > { %v2501_v55 = vpop.eup %1792  ;;  %v1161_v56 = vmul.f32 1.442695, %v1157_v54  ;;  %v1167_v59 = vmul.f32 1.442695, %v1160_v57 }
 0x271   : > { %v1175_v58 = vsel %vm752_vm2, %v2501_v55, 0.0 }
 0x272   : > { %1176 = vadd.xlane.f32.xlu2 %v1175_v58  ;;  %1794 = vpow2.f32 %v1161_v56 }
 0x273   : > { %1796 = vpow2.f32 %v1167_v59 }
 0x275   : > { %v1150_v60 = vpop.xlane.xlu1 %1149  ;;  %v765_v7 = vpop.permute.xlu2 %764 }
 0x276   : > { %v1158_v61 = vsub.f32 %v1090_v44, %v1150_v60  ;;  %v779_v8 = vrot.slane %v765_v7, 4 }
 0x278   : > { %v1163_v62 = vmul.f32 1.442695, %v1158_v61  ;;  %v2505_v63 = vpop.eup %1794 }
 0x279   : > { %v1169_v0 = vsel %vm752_vm2, %v2505_v63, 0.0  ;;  %v2509_v1 = vpop.eup %1796 }
 0x27a   : > { %1798 = vpow2.f32 %v1163_v62  ;;  %1170 = vadd.xlane.f32.xlu0 %v1169_v0  ;;  %v1178_v5 = vsel %vm752_vm2, %v2509_v1, 0.0 }
 0x280   : > { %v2511_v2 = vpop.eup %1798  ;;  %v759_v3 = vpop.permute.xlu0 %758 }
 0x281   : > { %v1172_v4 = vsel %vm752_vm2, %v2511_v2, 0.0  ;;  %v781_v6 = vrot.slane %v759_v3, 4  ;;  %v780_v10 = vsel %vm642_vm1, %v779_v8, %v759_v3 }
 0x282   : > { %1173 = vadd.xlane.f32.xlu1 %v1172_v4  ;;  %1179 = vadd.xlane.f32.xlu0 %v1178_v5  ;;  %v786_v13 = vperm.slane %v780_v10, %v2390_v27 }
 0x283   : > { %v782_v9 = vsel %vm642_vm1, %v765_v7, %v781_v6 }
 0x284   : > { %v790_v11 = vperm.slane %v782_v9, %v2390_v27  ;;  %v791_v20 = vrot.slane %v786_v13, 4 }
 0x286   : > { %v803_v17 = vrot.slane %v790_v11, 4 }
 0x28d   : > { %v762_v14 = vpop.permute.xlu1 %761 }
 0x28e   : > { %v767_v15 = vrot.slane %v762_v14, 4  ;;  %v770_v16 = vsel %vm642_vm1, %v762_v14, %v769_v12 }
 0x28f   : > { %v778_v18 = vperm.slane %v770_v16, %v2390_v27 }
 0x290   : > { %v768_v19 = vsel %vm642_vm1, %v767_v15, %v629_v48 }
 0x291   : > { %v774_v21 = vperm.slane %v768_v19, %v2390_v27  ;;  %v804_v22 = vsel %vm642_vm1, %v803_v17, %v778_v18  ;;  %v805_v23 = vrot.slane %v778_v18, 4 }
 0x292   : > { %v810_v24 = vperm.slane %v804_v22, %v2403_v46 }
 0x293   : > { %v792_v25 = vsel %vm642_vm1, %v791_v20, %v774_v21  ;;  %v793_v26 = vrot.slane %v774_v21, 4  ;;  %v806_v28 = vsel %vm642_vm1, %v790_v11, %v805_v23 }
 0x294   : > { %v798_v29 = vperm.slane %v792_v25, %v2403_v46  ;;  %v814_v30 = vperm.slane %v806_v28, %v2403_v46  ;;  %v819_v33 = vrot.slane %v810_v24, 4 }
 0x295   : > { %v794_v31 = vsel %vm642_vm1, %v786_v13, %v793_v26 }
 0x296   : > { %v802_v32 = vperm.slane %v794_v31, %v2403_v46  ;;  %v821_v34 = vrot.slane %v814_v30, 4  ;;  %v815_v35 = vrot.slane %v798_v29, 4  ;;  %v820_v42 = vsel %vm642_vm1, 0.0, %v819_v33 }
 0x298   : > { %v817_v36 = vrot.slane %v802_v32, 4  ;;  %v822_v37 = vsel %vm642_vm1, 0.0, %v821_v34  ;;  %v834_v38 = vsel %vm642_vm1, %v821_v34, %v810_v24  ;;  %v816_v49 = vsel %vm642_vm1, 0.0, %v815_v35 }
 0x299   : > { %v838_v39 = vperm.slane %v834_v38, %v2390_v27  ;;  %v839_v40 = vrot.slane %v822_v37, 4 }
 0x29a   : > { %v818_v41 = vsel %vm642_vm1, 0.0, %v817_v36  ;;  %v823_v43 = vsel %vm642_vm1, %v817_v36, %v798_v29 }
 0x29b   : > { %v827_v44 = vperm.slane %v823_v43, %v2390_v27  ;;  %v828_v45 = vrot.slane %v818_v41, 4  ;;  %v840_v47 = vsel %vm642_vm1, %v839_v40, %v820_v42  ;;  %v859_v48 = vrot.slane %v838_v39, 4 }
 0x29c   : > { %v844_v50 = vperm.slane %v840_v47, %v2390_v27 }
 0x29d   : > { %v829_v51 = vsel %vm642_vm1, %v828_v45, %v816_v49  ;;  %v847_v52 = vrot.slane %v827_v44, 4 }
 0x29e   : > { %v833_v53 = vperm.slane %v829_v51, %v2390_v27  ;;  %v857_v54 = vrot.slane %v844_v50, 4  ;;  %v860_v56 = vsel %vm642_vm1, %v844_v50, %v859_v48 }
 0x29f   : > { %v868_v57 = vperm.slane %v860_v56, %v2403_v46 }
 0x2a0   : > { %v845_v58 = vrot.slane %v833_v53, 4  ;;  %v848_v59 = vsel %vm642_vm1, %v833_v53, %v847_v52  ;;  %v858_v60 = vsel %vm642_vm1, %v857_v54, %v838_v39 }
 0x2a1   : > { %v856_v61 = vperm.slane %v848_v59, %v2403_v46  ;;  %v864_v62 = vperm.slane %v858_v60, %v2403_v46  ;;  %v873_v0 = vrot.slane %v868_v57, 4 }
 0x2a2   : > { %v846_v3 = vsel %vm642_vm1, %v845_v58, %v827_v44 }
 0x2a3   : > { %v852_v4 = vperm.slane %v846_v3, %v2403_v46  ;;  %v869_v5 = vrot.slane %v864_v62, 4  ;;  %v874_v6 = vsel %vm642_vm1, %v873_v0, %v856_v61  ;;  %v875_v7 = vrot.slane %v856_v61, 4 }
 0x2a4   : > { %879 = vst.msk [vmem:[#allocation3 + $0x10] sm:$0xff] %vm752_vm2, %v874_v6 }
 0x2a5   : > { %v870_v8 = vsel %vm642_vm1, %v869_v5, %v852_v4  ;;  %v871_v9 = vrot.slane %v852_v4, 4  ;;  %v876_v10 = vsel %vm642_vm1, %v868_v57, %v875_v7 }
 0x2a6   : > { %877 = vst.msk [vmem:[#allocation3] sm:$0xff] %vm752_vm2, %v870_v8 }
 0x2a7   : > { %v872_v11 = vsel %vm642_vm1, %v864_v62, %v871_v9  ;;  %880 = vst.msk [vmem:[#allocation3 + $0x18] sm:$0xff] %vm752_vm2, %v876_v10 }
 0x2a8   : > { %878 = vst.msk [vmem:[#allocation3 + $0x8] sm:$0xff] %vm752_vm2, %v872_v11 }
 0x2ab   : > { %v1191_v12 = vld [vmem:[#allocation3 + $0x10] sm:$0xff] }
 0x2ac   : > { %1257 = vmatpush.msra.mxu0 %v1191_v12 }
 0x2ad   : > { %v1189_v13 = vld [vmem:[#allocation3] sm:$0xff] }
 0x2ae   : > { %1211 = vmatpush.msrb.mxu2 %v1189_v13  ;;  %v1192_v14 = vld [vmem:[#allocation3 + $0x18] sm:$0xff] }
 0x2af   : > { %1280 = vmatpush.msra.mxu1 %v1192_v14  ;;  %v1190_v15 = vld [vmem:[#allocation3 + $0x8] sm:$0xff] }
 0x2b0   : > { %1234 = vmatpush.msra.mxu3 %v1190_v15 }
 0x2e5   : > { %v1177_v16 = vpop.xlane.xlu2 %1176 }
 0x2e6   : > { %1800 = vrcp.f32 %v1177_v16 }
 0x2ec   : > { %v1801_v17 = vpop.eup %1800 }
 0x2ed   : > { %v1187_v18 = vmul.f32 %v1801_v17, %v2501_v55  ;;  %v1171_v19 = vpop.xlane.xlu0 %1170 }
 0x2ee   : > { %1802 = vrcp.f32 %v1171_v19 }
 0x2ef   : > { %1658 = vmatmul.msk.f32.vlgmr.msra.gmra.mxu0 %vm752_vm2, %v1187_v18 }
 0x2f4   : > { %v1803_v20 = vpop.eup %1802 }
 0x2f5   : > { %v1174_v21 = vpop.xlane.xlu1 %1173  ;;  %v1180_v22 = vpop.xlane.xlu0 %1179  ;;  %v1185_v23 = vmul.f32 %v1803_v20, %v2505_v63 }
 0x2f6   : > { %1804 = vrcp.f32 %v1174_v21 }
 0x2f7   : > { %1806 = vrcp.f32 %v1180_v22  ;;  %1656 = vmatmul.msk.f32.vlgmr.msrb.gmra.mxu2 %vm752_vm2, %v1185_v23 }
 0x2fc   : > { %v1805_v24 = vpop.eup %1804 }
 0x2fd   : > { %v1807_v25 = vpop.eup %1806  ;;  %v1186_v26 = vmul.f32 %v1805_v24, %v2511_v2 }
 0x2fe   : > { %v1188_v28 = vmul.f32 %v1807_v25, %v2509_v1 }
 0x2ff   : > { %1657 = vmatmul.msk.f32.vlgmr.msra.gmra.mxu3 %vm752_vm2, %v1186_v26 }
 0x300   : > { %1659 = vmatmul.msk.f32.vlgmr.msra.gmra.mxu1 %vm752_vm2, %v1188_v28 }
 0x36c   : > { %v1259_v55 = vpop.f32.mrf.mxu0 }
 0x36d   : > { %v1285_v29 = vrot.slane %v1259_v55, 4 }
 0x37a   : > { %v1213_v30 = vpop.f32.mrf.mxu2 }
 0x37b   : > { %v1287_v31 = vrot.slane %v1213_v30, 4  ;;  %v1286_v32 = vsel %vm642_vm1, %v1285_v29, %v1213_v30 }
 0x37c   : > { %v1292_v34 = vperm.slane %v1286_v32, %v2390_v27  ;;  %v1414_v32 = vld [vmem:[#allocation15 + $0x10] sm:$0xff] }
 0x37d   : > { %v1282_v63 = vpop.f32.mrf.mxu1  ;;  %v1288_v33 = vsel %vm642_vm1, %v1259_v55, %v1287_v31  ;;  %v1415_v31 = vld [vmem:[#allocation15 + $0x18] sm:$0xff] }
 0x37e   : > { %v1297_v35 = vrot.slane %v1282_v63, 4  ;;  %v1296_v2 = vperm.slane %v1288_v33, %v2390_v27  ;;  %v1311_v38 = vrot.slane %v1292_v34, 4  ;;  %1435 = vmatpush.msra.mxu2 %v1415_v31 }
 0x380   : > { %v1323_v41 = vrot.slane %v1296_v2, 4  ;;  %1436 = vmatpush.msra.mxu2 %v1414_v32 }
 0x382   : > { %v1236_v36 = vpop.f32.mrf.mxu3 }
 0x383   : > { %v1298_v1 = vsel %vm642_vm1, %v1297_v35, %v1236_v36  ;;  %v1299_v37 = vrot.slane %v1236_v36, 4 }
 0x384   : > { %v1304_v39 = vperm.slane %v1298_v1, %v2390_v27 }
 0x385   : > { %v1300_v40 = vsel %vm642_vm1, %v1282_v63, %v1299_v37  ;;  %v1413_v63 = vld [vmem:[#allocation15 + $0x8] sm:$0xff]  ;;  %v1791_v37 = vld [vmem:[%s2710_s27] ss:$0 sm:$0xff] }
 0x386   : > { %v1308_v42 = vperm.slane %v1300_v40, %v2390_v27  ;;  %v1309_v43 = vrot.slane %v1304_v39, 4  ;;  %v1312_v44 = vsel %vm642_vm1, %v1304_v39, %v1311_v38  ;;  %1437 = vmatpush.msra.mxu2 %v1413_v63 }
 0x387   : > { %v1320_v45 = vperm.slane %v1312_v44, %v2403_v46 }
 0x388   : > { %v1310_v47 = vsel %vm642_vm1, %v1309_v43, %v1292_v34  ;;  %v1321_v48 = vrot.slane %v1308_v42, 4  ;;  %v1324_v49 = vsel %vm642_vm1, %v1308_v42, %v1323_v41 }
 0x389   : > { %v1316_v50 = vperm.slane %v1310_v47, %v2403_v46  ;;  %v1332_v51 = vperm.slane %v1324_v49, %v2403_v46  ;;  %v1335_v52 = vrot.slane %v1320_v45, 4 }
 0x38a   : > { %v1322_v53 = vsel %vm642_vm1, %v1321_v48, %v1296_v2 }
 0x38b   : > { %v1328_v54 = vperm.slane %v1322_v53, %v2403_v46  ;;  %v1333_v56 = vrot.slane %v1316_v50, 4  ;;  %v1336_v57 = vsel %vm642_vm1, 0.0, %v1335_v52  ;;  %v1339_v58 = vrot.slane %v1332_v51, 4 }
 0x38c   : > { %v1341_v59 = vsel %vm642_vm1, %v1335_v52, %v1316_v50  ;;  %v1346_v60 = vrot.slane %v1336_v57, 4 }
 0x38d   : > { %v1334_v61 = vsel %vm642_vm1, 0.0, %v1333_v56  ;;  %v1337_v62 = vrot.slane %v1328_v54, 4  ;;  %v1340_v0 = vsel %vm642_vm1, 0.0, %v1339_v58  ;;  %v1345_v3 = vperm.slane %v1341_v59, %v2390_v27 }
 0x38e   : > { %v1357_v4 = vrot.slane %v1340_v0, 4  ;;  %v1347_v5 = vsel %vm642_vm1, %v1346_v60, %v1334_v61  ;;  %v1352_v6 = vsel %vm642_vm1, %v1339_v58, %v1328_v54 }
 0x38f   : > { %v1338_v7 = vsel %vm642_vm1, 0.0, %v1337_v62  ;;  %v1351_v8 = vperm.slane %v1347_v5, %v2390_v27  ;;  %v1356_v9 = vperm.slane %v1352_v6, %v2390_v27  ;;  %v1365_v10 = vrot.slane %v1345_v3, 4 }
 0x390   : > { %v1358_v11 = vsel %vm642_vm1, %v1357_v4, %v1338_v7 }
 0x391   : > { %v1362_v12 = vperm.slane %v1358_v11, %v2390_v27  ;;  %v1366_v13 = vsel %vm642_vm1, %v1351_v8, %v1365_v10  ;;  %v1377_v14 = vrot.slane %v1356_v9, 4  ;;  %v1363_v15 = vrot.slane %v1351_v8, 4 }
 0x392   : > { %v1374_v16 = vperm.slane %v1366_v13, %v2403_v46 }
 0x393   : > { %v1378_v17 = vsel %vm642_vm1, %v1362_v12, %v1377_v14  ;;  %v1364_v18 = vsel %vm642_vm1, %v1363_v15, %v1345_v3  ;;  %v1375_v19 = vrot.slane %v1362_v12, 4 }
 0x394   : > { %v1386_v20 = vperm.slane %v1378_v17, %v2403_v46  ;;  %v1393_v21 = vrot.slane %v1374_v16, 4  ;;  %v1370_v22 = vperm.slane %v1364_v18, %v2403_v46 }
 0x395   : > { %v1376_v23 = vsel %vm642_vm1, %v1375_v19, %v1356_v9 }
 0x396   : > { %v1394_v27 = vsel %vm642_vm1, %v1386_v20, %v1393_v21  ;;  %v1391_v24 = vrot.slane %v1386_v20, 4  ;;  %v1382_v25 = vperm.slane %v1376_v23, %v2403_v46  ;;  %v1389_v26 = vrot.slane %v1370_v22, 4  ;;  %v1412_v46 = vld [vmem:[#allocation15] sm:$0xff] }
 0x397   : > { %1404 = vrot.lane.b32.xlu2 %v1394_v27, %s2125_s10  ;;  %1438 = vmatpush.msra.mxu2 %v1412_v46 }
 0x398   : > { %v1392_v28 = vsel %vm642_vm1, %v1391_v24, %v1374_v16  ;;  %v1387_v55 = vrot.slane %v1382_v25, 4  ;;  %v1390_v29 = vsel %vm642_vm1, %v1382_v25, %v1389_v26 }
 0x399   : > { %1400 = vrot.lane.b32.xlu0 %v1392_v28, %s2126_s12  ;;  %1396 = vrot.lane.b32.xlu1 %v1390_v29, %s2127_s28 }
 0x39a   : > { %v1388_v30 = vsel %vm642_vm1, %v1387_v55, %v1370_v22 }
 0x3f1   : > { %v1405_v2 = vpop.permute.xlu2 %1404 }
 0x40b   : > { %v1401_v33 = vpop.permute.xlu0 %1400  ;;  %v1397_v34 = vpop.permute.xlu1 %1396 }
 0x40c   : > { %v1407_v35 = vsel %vm752_vm2, %v1388_v30, %v1397_v34 }
 0x40d   : > { %v1409_v36 = vsel %vm1408_vm3, %v1407_v35, %v1401_v33 }
 0x40e   : > { %v1411_v1 = vsel %vm1410_vm4, %v1409_v36, %v1405_v2 }
 0x40f   : > { %1660 = vmatmul.msk.f32.vlgmr.msra.gmra.mxu2 %vm576_vm0, %v1411_v1 }
 0x492   : > { %v1440_v38 = vpop.f32.mrf.mxu2 }
 0x493   : > { %v1441_v39 = vadd.f32 %v1791_v37, %v1440_v38 }
 0x495   : > { %1443 = vst.msk [vmem:[%s561_s24] sm:$0xff] %vm576_vm0, %v1441_v39 }
 0x496   : > { %2045 = shalt.err (!%p2042_p13)
}
 0x497   : > { %1687 = dma.vmem_to_hbm [thread:$0]  (%p2276_p2), %s1459_s23, 128, %s1461_s14, %s1445_s29  }
 0x498 PF: > { %s2711_s15 = sld [smem:[#allocation22_spill]]  ;;  %p1713_p0 = pnand %p1629_p6, %p2283_p7 }
 0x499   : > { %s2713_s10 = sld [smem:[#allocation24_spill]] }
 0x49a   : > { %p1714_p4 = pneg %p1713_p0 }
 0x49e   : > { %s1472_s12 = sand.u32 1, %s2711_s15  }
 0x49f   : > { %s1473_s28 = scalar_lea.sflag [#allocation6], %s1472_s12 }
 0x4a0   : > { %2087 = dma.done.wait (%p1714_p4), %s1473_s28, 128  }
 0x4a1   : > { %2089 = vsyncadd (%p1714_p4), %s1473_s28, 4294967168  ;;  %s32_s22 = sadd.s32 1, %s2713_s10   ;;  %s2714_s21 = sld [smem:[#allocation27_spill]] }
 0x4a2   : > { %p29_p9 = scmp.ge.s32.totalorder %s32_s22, 4   ;;  %s2715_s20 = sld [smem:[#allocation23_spill]] }
 0x4a3   : > { %s2716_s26 = sld [smem:[#allocation25_spill]]  ;;  %s2717_s17 = smov %s2096_s18 }
 0x4a4   : > { %s2718_s18 = smov %s2100_s19 }
 0x4a5   :  { %31 = sbr.rel (!%p29_p9) target bundleno = 18 (0x12), region = 153 }
 0x4a7   : > { %s2719_s19 = smov %s2714_s21 }
 0x4a9   : > { %s2720_s21 = smov %s2716_s26 }
 0x4aa   :  { %1479 = vsyncpa [#allocation5], 1 }
 0x4ab   :  { %1481 = vsyncpa [#allocation5 + $0x1], 1 }
 0x4ac   :  { %1482 = vsyncpa [#allocation8], 1 }
 0x4ad   :  { %1484 = vsyncpa [#allocation8 + $0x1], 1 }
 0x4ae   :  { %1485 = vsyncpa [#allocation11], 1 }
 0x4af   :  { %1486 = vsyncpa [#allocation14], 1 }
 0x4b0   :  { %1487 = vsyncpa [#allocation6], 1 }
 0x4b1   :  { %1489 = vsyncpa [#allocation6 + $0x1], 1 }

</bundles_post_ra>
